<compile_context>
chip_gen: v7x
topology: tpu7x:2x2x1
jax: 0.10.0
libtpu: 0.0.40
codegen_flags: <defaults>
</compile_context>

<pallas_src>
import functools
import math

import jax
import jax.numpy as jnp
from jax import lax
from jax.experimental import pallas as pl
from jax.experimental.pallas import tpu as pltpu

_LANES = 128
_SUBLANES = 8
_MIN_SPLIT_BYTES = 8 * 1024 * 1024   # above this, force >= _MIN_GRID_STEPS grid steps
_MIN_GRID_STEPS = 4                  # enough steps to shard across v7x's 2 TensorCores
_VMEM_LIMIT_BYTES = 32 * 1024 * 1024


def _pick_block_bytes() -> int:
    """Per-buffer block bytes by TPU generation (2 in + 2 out double-buffered)."""
    try:
        kind = jax.devices()[0].device_kind.lower()
    except Exception:  # pragma: no cover - e.g. interpret mode / no device
        kind = ""
    if "v7" in kind or "7x" in kind:
        # ~3.2 TB/s HBM: larger tiles needed to stay past the roofline knee.
        return 5 * 1024 * 1024
    if "v5 lite" in kind or "v5e" in kind or "v5lite" in kind:
        # Slower HBM; 1.5 MiB is already at the knee and keeps VMEM pressure low.
        return 1536 * 1024
    # v6e and default.
    return 2 * 1024 * 1024


def _activate_kernel(x_ref, o_ref, *, abit: int, quantize: bool,
                     approximate: bool, fast_quant: bool):
    x = x_ref[...]
    if abit == 32:
        # GELU. Compute in f32 (safe on v5e: no bf16 VPU/EUP), cast back at the end.
        xf = x.astype(jnp.float32)
        if approximate:
            # tanh-approx GELU: tanh runs on the EUP (separate VLIW slot).
            c = math.sqrt(2.0 / math.pi)
            inner = c * (xf + 0.044715 * xf * xf * xf)
            y = 0.5 * xf * (1.0 + jnp.tanh(inner))
        else:
            # Exact erf GELU — bit-parity with nn.GELU() default.
            y = 0.5 * xf * (1.0 + lax.erf(xf * (1.0 / math.sqrt(2.0))))
        o_ref[...] = y.astype(o_ref.dtype)
    else:
        # clamp/round in the native dtype, exactly as torch does (abit <= 8 keeps the
        # scaled integers exact even in bf16).
        y = jnp.clip(x, 0.0, 1.0)
        if quantize:
            n = float(2 ** abit - 1)
            if n == 1.0:
                y = jnp.round(y)
            elif fast_quant:
                # ~1 ulp deviation vs. true division; keeps the path HBM-bound on v7x.
                y = jnp.round(y * n) * (1.0 / n)
            else:
                y = jnp.round(y * n) / n  # round-half-to-even == torch.round
        o_ref[...] = y.astype(o_ref.dtype)


def activate(x, a_bit: int, quantize: bool = True,
             approximate_gelu: bool = False, fast_quant: bool = False):
    """Pallas equivalent of GAROS `Activate(a_bit, quantize)` forward."""
    assert a_bit <= 8 or a_bit == 32  # mirrors activation_quantize_fn.__init__

    orig_shape = x.shape
    dtype = x.dtype
    itemsize = jnp.dtype(dtype).itemsize
    total = int(x.size)
    if total == 0:
        return x

    block_bytes = _pick_block_bytes()

    kernel = functools.partial(
        _activate_kernel, abit=int(a_bit), quantize=bool(quantize),
        approximate=bool(approximate_gelu), fast_quant=bool(fast_quant))

    if a_bit == 32:
        flops_per = 12 if approximate_gelu else 28  # erf = VALU polynomial, not EUP
        transc = total if approximate_gelu else 0
    else:
        flops_per = 6
        transc = 0
    cost = pl.CostEstimate(
        flops=flops_per * total,
        transcendentals=transc,
        bytes_accessed=2 * total * itemsize,
    )
    cparams = pltpu.CompilerParams(
        dimension_semantics=("parallel",),
        vmem_limit_bytes=_VMEM_LIMIT_BYTES,
    )

    # Lane-dense 2-D slab: widest multiple-of-128 width dividing the element count,
    # so the reshape is a pure bitcast (no extra HBM pass).
    width = next((w for w in (2048, 1024, 512, 256, 128) if total % w == 0), None)

    if width is not None:
        x2d = x.reshape(-1, width)
        rows = x2d.shape[0]

        # Row block sized for ~block_bytes, aligned to the packed-sublane multiple.
        sub = _SUBLANES * max(1, 4 // itemsize)
        target_rows = max(sub, (block_bytes // itemsize) // width)
        block_rows = min(rows, target_rows)
        if rows * width * itemsize >= _MIN_SPLIT_BYTES:
            # Keep >= _MIN_GRID_STEPS grid steps so the parallel axis actually shards
            # across both v7x TensorCores (neutral on single-TC v5e/v6e).
            block_rows = min(block_rows, pl.cdiv(rows, _MIN_GRID_STEPS))
        block_rows = (block_rows // sub) * sub
        if block_rows == 0:
            block_rows = rows  # tiny input: single full-extent block is legal.

        grid = (pl.cdiv(rows, block_rows),)  # ragged last row-block masked by Pallas.
        out2d = pl.pallas_call(
            kernel,
            out_shape=jax.ShapeDtypeStruct((rows, width), dtype),
            grid_spec=pltpu.PrefetchScalarGridSpec(
                num_scalar_prefetch=0,
                grid=grid,
                in_specs=[pl.BlockSpec((block_rows, width), lambda i: (i, 0))],
                out_specs=pl.BlockSpec((block_rows, width), lambda i: (i, 0)),
            ),
            compiler_params=cparams,
            cost_estimate=cost,
        )(x2d)
        return out2d.reshape(orig_shape)

    # Ragged fallback (element count not a multiple of 128): keep a 1-D view with a
    # lane-multiple block and let the cdiv grid mask the ragged last block — no pad,
    # no output slice, no extra HBM passes.
    x1d = x.reshape(-1)
    unit = _SUBLANES * _LANES  # 1024 elements = one (8,128) f32 vreg tile
    target_elems = max(unit, ((block_bytes // itemsize) // unit) * unit)
    if total <= target_elems:
        block_elems = total          # single full-extent block (always legal)
    else:
        block_elems = target_elems   # multiple of 128; ragged tail masked by Pallas
    grid = (pl.cdiv(total, block_elems),)

    out1d = pl.pallas_call(
        kernel,
        out_shape=jax.ShapeDtypeStruct((total,), dtype),
        grid_spec=pltpu.PrefetchScalarGridSpec(
            num_scalar_prefetch=0,
            grid=grid,
            in_specs=[pl.BlockSpec((block_elems,), lambda i: (i,))],
            out_specs=pl.BlockSpec((block_elems,), lambda i: (i,)),
        ),
        compiler_params=cparams,
        cost_estimate=cost,
    )(x1d)
    return out1d.reshape(orig_shape)


if __name__ == "__main__":
    key = jax.random.PRNGKey(0)
    x = jax.random.normal(key, (2, 4, 16, 16), dtype=jnp.float32)

    # Quantized path: abit=4 -> clamp(0,1) then 4-bit uniform quantization.
    y_q = jax.block_until_ready(activate(x, a_bit=4, quantize=True))
    # Full-precision path: abit=32 -> exact GELU (quantizer is a no-op).
    y_fp = jax.block_until_ready(activate(x, a_bit=32, quantize=True))
    # Flag-gated fast GELU (tanh approximation, EUP path) — numerics-changing.
    y_fp_tanh = jax.block_until_ready(
        activate(x, a_bit=32, quantize=True, approximate_gelu=True))

    ref_q = jnp.round(jnp.clip(x, 0.0, 1.0) * 15.0) / 15.0
    ref_fp = 0.5 * x * (1.0 + lax.erf(x / jnp.sqrt(2.0)))
    assert y_q.shape == x.shape and y_fp.shape == x.shape
    assert jnp.max(jnp.abs(y_q - ref_q)) < 1e-6
    assert jnp.max(jnp.abs(y_fp - ref_fp)) < 1e-5
    assert jnp.max(jnp.abs(y_fp_tanh - ref_fp)) < 3e-3

    # Ragged path: element count (105) not a multiple of 128, handled without pad/slice.
    x_odd = jax.random.normal(jax.random.PRNGKey(1), (3, 5, 7), dtype=jnp.float32)
    y_odd = jax.block_until_ready(activate(x_odd, a_bit=2, quantize=True))
    ref_odd = jnp.round(jnp.clip(x_odd, 0.0, 1.0) * 3.0) / 3.0
    assert y_odd.shape == x_odd.shape
    assert jnp.max(jnp.abs(y_odd - ref_odd)) < 1e-6

    print("KERNEL_OK")
</pallas_src>

<mosaic_0001>
module attributes {stable_mosaic.version = 11 : i64} {
  func.func @_activate_kernel(%arg0: i32, %arg1: memref<1x2048xf32, #tpu.memory_space<vmem>>, %arg2: memref<1x2048xf32, #tpu.memory_space<vmem>>) attributes {dimension_semantics = [#tpu.dimension_semantics<parallel>], iteration_bounds = array<i64: 1>, scalar_prefetch = 0 : i64, scratch_operands = 0 : i64, tpu.core_type = #tpu.core_type<tc>, window_params = [{transform_indices = @transform_0, window_bounds = array<i64: 1, 2048>}, {transform_indices = @transform_1, window_bounds = array<i64: 1, 2048>}]} {
    %c0 = arith.constant 0 : index
    %c0_0 = arith.constant 0 : index
    %0 = vector.load %arg1[%c0, %c0_0] : memref<1x2048xf32, #tpu.memory_space<vmem>>, vector<1x2048xf32>
    %cst = arith.constant 0.000000e+00 : f32
    %cst_1 = arith.constant 1.000000e+00 : f32
    %1 = vector.broadcast %cst : f32 to vector<1x2048xf32>
    %2 = arith.maximumf %1, %0 : vector<1x2048xf32>
    %3 = vector.broadcast %cst_1 : f32 to vector<1x2048xf32>
    %4 = arith.minimumf %3, %2 : vector<1x2048xf32>
    %cst_2 = arith.constant 1.500000e+01 : f32
    %5 = vector.broadcast %cst_2 : f32 to vector<1x2048xf32>
    %6 = arith.mulf %4, %5 : vector<1x2048xf32>
    %7 = math.roundeven %6 : vector<1x2048xf32>
    %cst_3 = arith.constant 1.500000e+01 : f32
    %8 = vector.broadcast %cst_3 : f32 to vector<1x2048xf32>
    %9 = arith.divf %7, %8 : vector<1x2048xf32>
    %c0_4 = arith.constant 0 : index
    %c0_5 = arith.constant 0 : index
    %10 = vector.load %arg2[%c0_4, %c0_5] : memref<1x2048xf32, #tpu.memory_space<vmem>>, vector<1x2048xf32>
    tpu.vector_store %arg2[%c0_4, %c0_5], %9 {strides = array<i32>} : memref<1x2048xf32, #tpu.memory_space<vmem>>, vector<1x2048xf32>,
    return
  }
  func.func @transform_0(%arg0: i32) -> (i32, i32) {
    %c0_i32 = arith.constant 0 : i32
    %c0_i32_0 = arith.constant 0 : i32
    return %arg0, %c0_i32 : i32, i32
  }
  func.func @transform_1(%arg0: i32) -> (i32, i32) {
    %c0_i32 = arith.constant 0 : i32
    %c0_i32_0 = arith.constant 0 : i32
    return %arg0, %c0_i32 : i32, i32
  }
}

</mosaic_0001>

<bundles_post_ra>
// kernel: tpu_custom_call.1
= control target key start
LH: loop header
LB: loop body
LE: loop exit
PB: predicated region body
PF: predicated region fallthrough
CT: control target
= control target key end

     0   :  { %6 = vsyncpa [#allocation3], 0  ;;  %s139_s0 = inlined_call_operand.hbm [shape: f32[1,2048], index: 0, kind: input, shape index: {}]   ;;  %s140_s1 = inlined_call_operand.hbm [shape: f32[1,2048], index: 1, kind: output, shape index: {}]  }
   0x1   :  { %7 = vsyncpa [#allocation4], 0  ;;  %s103_s6 = smov [#allocation2]   ;;  %s55_s10 = scalar_lea.hbm %s139_s0, 256 }
   0x2   :  { %s14_s7 = sshll.u32 %s103_s6, 4  ;;  %p56_p0 = scmp.ne.s32.totalorder %s139_s0, %s55_s10  ;;  %s15_s7 = int_to_ptr.vmem [resolvable:$true] %s14_s7 }
   0x3   :  { %p59_p1 = scmp.lt.u32.totalorder %s55_s10, %s139_s0 }
   0x5   :  { %p61_p2 = pnand %p59_p1, %p56_p0 }
   0x7   :  { %64 = shalt.err (!%p61_p2)
}
   0x8   :  { %s65_s15 = scalar_lea.vmem %s15_s7, 256  ;;  %p70_p4 = scmp.lt.s32.totalorder %s15_s7, %s15_s7 }
   0x9   :  { %p66_p3 = scmp.ne.s32.totalorder %s15_s7, %s65_s15  ;;  %p71_p5 = scmp.lt.s32.totalorder %s65_s15, %s65_s15 }
   0xb   :  { %p72_p6 = por %p71_p5, %p70_p4 }
   0xd   :  { %p73_p7 = pnand %p72_p6, %p66_p3 }
   0xf   :  { %76 = shalt.err (!%p73_p7)
}
  0x10   :  { %17 = dma.hbm_to_vmem [thread:$0]  %s139_s0, 256, %s15_s7, [#allocation3]  }
  0x11   :  { %99 = dma.done.wait [#allocation3], 256  }
  0x12   :  { %100 = vsyncadd [#allocation3], 4294967040  ;;  %v21_v0 = vld [vmem:[#allocation2] sm:$0xff]  ;;  %v22_v1 = vld [vmem:[#allocation2 + $0x8] sm:$0xff]  ;;  %s104_s18 = smov [#allocation5]  }
  0x13   :  { %v23_v2 = vmax.f32 %v21_v0, 0.0  ;;  %v24_v3 = vmax.f32 %v22_v1, 0.0  ;;  %s42_s19 = sshll.u32 %s104_s18, 4  ;;  %s43_s19 = int_to_ptr.vmem [resolvable:$true] %s42_s19 }
  0x14   :  { %s77_s0 = scalar_lea.vmem %s43_s19, 256  ;;  %p82_p9 = scmp.lt.s32.totalorder %s43_s19, %s43_s19 }
  0x15   :  { %v25_v4 = vmin.f32 %v23_v2, 1.0  ;;  %v26_v5 = vmin.f32 %v24_v3, 1.0  ;;  %p78_p8 = scmp.ne.s32.totalorder %s43_s19, %s77_s0  ;;  %p83_p10 = scmp.lt.s32.totalorder %s77_s0, %s77_s0 }
  0x17   :  { %v27_v6 = vmul.f32 15.0, %v25_v4  ;;  %v28_v7 = vmul.f32 15.0, %v26_v5  ;;  %p84_p11 = por %p83_p10, %p82_p9 }
  0x19   :  { %v51_v8 = vround.rtne.f32 %v27_v6  ;;  %v52_v9 = vround.rtne.f32 %v28_v7  ;;  %p85_p12 = pnand %p84_p11, %p78_p8 }
  0x1b   :  { %v32_v10 = vmul.f32 0.06666667, %v51_v8  ;;  %v33_v11 = vmul.f32 0.06666667, %v52_v9 }
  0x1d   :  { %34 = vst [vmem:[#allocation5] sm:$0xff] %v32_v10  ;;  %35 = vst [vmem:[#allocation5 + $0x8] sm:$0xff] %v33_v11 }
  0x1e   :  { %88 = shalt.err (!%p85_p12)
}
  0x1f   :  { %s89_s22 = scalar_lea.hbm %s140_s1, 256 }
  0x20   :  { %p90_p13 = scmp.ne.s32.totalorder %s140_s1, %s89_s22  ;;  %p93_p0 = scmp.lt.u32.totalorder %s89_s22, %s140_s1 }
  0x22   :  { %p95_p1 = pnand %p93_p0, %p90_p13 }
  0x24   :  { %98 = shalt.err (!%p95_p1)
}
  0x25   :  { %45 = dma.vmem_to_hbm [thread:$0]  %s43_s19, 256, %s140_s1, [#allocation4]  }
  0x26   :  { %101 = dma.done.wait [#allocation4], 256  }
  0x27   :  { %102 = vsyncadd [#allocation4], 4294967040 }
  0x28   :  { %49 = vsyncpa [#allocation3], 1 }
  0x29   :  { %50 = vsyncpa [#allocation4], 1 }

</bundles_post_ra>
